<compile_context>
chip_gen: v6e
topology: v6e:2x2x1
jax: 0.10.0
libtpu: 0.0.40
codegen_flags: <defaults>
</compile_context>

<pallas_src>
import jax
import jax.numpy as jnp
from jax.experimental import pallas as pl
from jax.experimental.pallas import tpu as pltpu

HIDDEN = 256  # fixed by the PyTorch module


def _round_up(x, m):
    return ((x + m - 1) // m) * m


# ----------------------------------------------------------------------------
# Kernel
# ----------------------------------------------------------------------------
def ram_ddqn_kernel(x_ref, wa_ref, wb_ref, wh_ref, b_ref, out_ref):
    """Full DDQN forward for one batch tile.

    x_ref  : (TB, in_pad)        f32   (zero-padded observation if needed)
    wa_ref : (in_pad + H, H)     bf16  rows [0, in_pad) = fc1, [in_pad, +H) = fc2
    wb_ref : (H, 2H)             bf16  [wa1 | wv1]  (fused head layer 1)
    wh_ref : (2H, A+1)           bf16  block-diag: wa2 in [0:H, 0:A],
                                                    wv2 in [H:2H, A:A+1]
    b_ref  : (1, 4H + A + 1)     f32   [b1 | b2 | ba1 | bv1 | ba2 | bv2]
    out_ref: (TB, A)             f32
    """
    H = HIDDEN
    in_sz = x_ref.shape[1]
    A1 = wh_ref.shape[1]          # num_actions + 1
    A = A1 - 1

    x = x_ref[...].astype(jnp.bfloat16)

    # fc1 + ReLU
    h1 = jnp.dot(x, wa_ref[0:in_sz, :], preferred_element_type=jnp.float32)
    h1 = jnp.maximum(h1 + b_ref[:, 0:H], 0.0).astype(jnp.bfloat16)

    # fc2 + ReLU
    h2 = jnp.dot(h1, wa_ref[in_sz:in_sz + H, :],
                 preferred_element_type=jnp.float32)
    h2 = jnp.maximum(h2 + b_ref[:, H:2 * H], 0.0).astype(jnp.bfloat16)

    # fused first layer of both heads: one (H, 2H) matmul -> [a1 | v1]
    h3 = jnp.dot(h2, wb_ref[...], preferred_element_type=jnp.float32)
    h3 = jnp.maximum(h3 + b_ref[:, 2 * H:4 * H], 0.0).astype(jnp.bfloat16)

    # fused second layer: block-diagonal (2H, A+1) matmul -> [adv | val]
    q = jnp.dot(h3, wh_ref[...], preferred_element_type=jnp.float32)
    q = q + b_ref[:, 4 * H:4 * H + A1]

    adv = q[:, 0:A]
    val = q[:, A:A1]
    out_ref[...] = val + adv - jnp.mean(adv, axis=1, keepdims=True)


# ----------------------------------------------------------------------------
# Host-side parameter packing + wrapper
# ----------------------------------------------------------------------------
def pack_params(params, input_size, num_actions, weight_dtype=jnp.bfloat16):
    """Pack 12 per-layer params into (slab_a, slab_b, head weight, bias row)."""
    (w1, b1, w2, b2, wa1, ba1, wa2, ba2, wv1, bv1, wv2, bv2) = params
    H = HIDDEN
    A = num_actions
    A1 = A + 1
    # Align the fc2 row offset to the bf16 (16, 128) tile height so the
    # in-kernel row slices are always tile-aligned (free).
    in_pad = _round_up(input_size, 16)

    slab_a = jnp.zeros((in_pad + H, H), jnp.float32)
    slab_a = slab_a.at[0:input_size, :].set(w1)
    slab_a = slab_a.at[in_pad:in_pad + H, :].set(w2)

    slab_b = jnp.concatenate([wa1, wv1], axis=1)            # (H, 2H)

    whead = jnp.zeros((2 * H, A1), jnp.float32)
    whead = whead.at[0:H, 0:A].set(wa2)
    whead = whead.at[H:2 * H, A:A1].set(wv2)

    bslab = jnp.concatenate([b1, b2, ba1, bv1, ba2, bv2], axis=1)  # (1, 4H+A1)

    return (slab_a.astype(weight_dtype), slab_b.astype(weight_dtype),
            whead.astype(weight_dtype), bslab.astype(jnp.float32))


def _pick_batch_tile(batch):
    """Batch tile selection (sublane-aligned)."""
    if batch <= 64:
        return batch                       # single program, full-array block
    if batch <= 1024:
        # >=2 programs so both v7x TensorCores get work; multiple of 8.
        return _round_up(pl.cdiv(batch, 2), 8)
    return 512                             # large-batch training path


def ram_ddqn_forward(x, packed, num_actions):
    slab_a, slab_b, whead, bslab = packed
    batch, input_size = x.shape
    H = HIDDEN
    in_pad = slab_a.shape[0] - H
    A1 = num_actions + 1

    # Zero-pad observations to the tile-aligned width (no-op for RAM size 128;
    # padded weight rows are zero so the result is unchanged).
    if input_size != in_pad:
        x = jnp.pad(x, ((0, 0), (0, in_pad - input_size)))

    TB = _pick_batch_tile(batch)
    grid = (pl.cdiv(batch, TB),)

    flops = int(2 * batch * (in_pad * H
                             + H * H
                             + H * 2 * H
                             + 2 * H * A1))
    bytes_accessed = int(x.size * x.dtype.itemsize
                         + slab_a.size * slab_a.dtype.itemsize
                         + slab_b.size * slab_b.dtype.itemsize
                         + whead.size * whead.dtype.itemsize
                         + bslab.size * bslab.dtype.itemsize
                         + batch * num_actions * 4)

    # Weights/biases: whole array pinned in VMEM for the call (one DMA each,
    # no per-step blocking, no double-buffer copies).
    weight_spec = pl.BlockSpec(memory_space=pltpu.MemorySpace.VMEM)

    return pl.pallas_call(
        ram_ddqn_kernel,
        out_shape=jax.ShapeDtypeStruct((batch, num_actions), jnp.float32),
        grid=grid,
        in_specs=[
            pl.BlockSpec((TB, in_pad), lambda i: (i, 0)),
            weight_spec,   # slab_a
            weight_spec,   # slab_b
            weight_spec,   # whead
            weight_spec,   # bslab
        ],
        out_specs=pl.BlockSpec((TB, num_actions), lambda i: (i, 0)),
        compiler_params=pltpu.CompilerParams(
            dimension_semantics=("parallel",)),
        cost_estimate=pl.CostEstimate(
            flops=flops, transcendentals=0, bytes_accessed=bytes_accessed),
    )(x, slab_a, slab_b, whead, bslab)


# ----------------------------------------------------------------------------
# Init + pure-JAX reference (matches the PyTorch forward, f32 weights)
# ----------------------------------------------------------------------------
def init_params(key, input_size, num_actions, hidden=HIDDEN):
    def linear(key, fan_in, fan_out):
        kw, kb = jax.random.split(key)
        bound = 1.0 / jnp.sqrt(fan_in)
        w = jax.random.uniform(kw, (fan_in, fan_out), jnp.float32, -bound, bound)
        b = jax.random.uniform(kb, (1, fan_out), jnp.float32, -bound, bound)
        return w, b

    keys = jax.random.split(key, 6)
    w1, b1 = linear(keys[0], input_size, hidden)
    w2, b2 = linear(keys[1], hidden, hidden)
    wa1, ba1 = linear(keys[2], hidden, hidden)
    wa2, ba2 = linear(keys[3], hidden, num_actions)
    wv1, bv1 = linear(keys[4], hidden, hidden)
    wv2, bv2 = linear(keys[5], hidden, 1)
    return (w1, b1, w2, b2, wa1, ba1, wa2, ba2, wv1, bv1, wv2, bv2)


def ram_ddqn_reference(x, params):
    (w1, b1, w2, b2, wa1, ba1, wa2, ba2, wv1, bv1, wv2, bv2) = params
    h1 = jnp.maximum(x @ w1 + b1, 0.0)
    h2 = jnp.maximum(h1 @ w2 + b2, 0.0)
    adv = jnp.maximum(h2 @ wa1 + ba1, 0.0) @ wa2 + ba2
    val = jnp.maximum(h2 @ wv1 + bv1, 0.0) @ wv2 + bv2
    return val + adv - adv.mean(axis=1, keepdims=True)


# ----------------------------------------------------------------------------
if __name__ == "__main__":
    key = jax.random.PRNGKey(0)
    k_params, k_x = jax.random.split(key)

    batch = 8
    input_size = 128   # Atari RAM observation size
    num_actions = 8

    params = init_params(k_params, input_size, num_actions)
    packed = pack_params(params, input_size, num_actions,
                         weight_dtype=jnp.bfloat16)
    x = jax.random.normal(k_x, (batch, input_size), jnp.float32)

    out = ram_ddqn_forward(x, packed, num_actions)
    out = jax.block_until_ready(out)

    ref = ram_ddqn_reference(x, params)
    assert out.shape == (batch, num_actions)
    # bf16 weights inside the kernel => relaxed tolerance vs the f32 reference.
    assert jnp.allclose(out, ref, atol=5e-2, rtol=5e-2), "mismatch vs reference"

    print("KERNEL_OK")
</pallas_src>

<mosaic_0001>
module attributes {stable_mosaic.version = 11 : i64} {
  func.func @ram_ddqn_kernel(%arg0: i32, %arg1: memref<8x128xf32, #tpu.memory_space<vmem>>, %arg2: memref<384x256xbf16, #tpu.memory_space<vmem>>, %arg3: memref<256x512xbf16, #tpu.memory_space<vmem>>, %arg4: memref<512x9xbf16, #tpu.memory_space<vmem>>, %arg5: memref<1x1033xf32, #tpu.memory_space<vmem>>, %arg6: memref<8x8xf32, #tpu.memory_space<vmem>>) attributes {dimension_semantics = [#tpu.dimension_semantics<parallel>], iteration_bounds = array<i64: 1>, scalar_prefetch = 0 : i64, scratch_operands = 0 : i64, tpu.core_type = #tpu.core_type<tc>, window_params = [{transform_indices = @transform_0, window_bounds = array<i64: 8, 128>}, {pipeline_mode = #tpu.pipeline_mode<synchronous>, transform_indices = @transform_1, window_bounds = array<i64: 384, 256>}, {pipeline_mode = #tpu.pipeline_mode<synchronous>, transform_indices = @transform_2, window_bounds = array<i64: 256, 512>}, {pipeline_mode = #tpu.pipeline_mode<synchronous>, transform_indices = @transform_3, window_bounds = array<i64: 512, 9>}, {pipeline_mode = #tpu.pipeline_mode<synchronous>, transform_indices = @transform_4, window_bounds = array<i64: 1, 1033>}, {transform_indices = @transform_5, window_bounds = array<i64: 8, 8>}]} {
    %c0 = arith.constant 0 : index
    %c0_0 = arith.constant 0 : index
    %0 = vector.load %arg1[%c0, %c0_0] : memref<8x128xf32, #tpu.memory_space<vmem>>, vector<8x128xf32>
    %1 = arith.truncf %0 : vector<8x128xf32> to vector<8x128xbf16>
    %c0_1 = arith.constant 0 : index
    %c0_2 = arith.constant 0 : index
    %2 = vector.load %arg2[%c0_1, %c0_2] : memref<384x256xbf16, #tpu.memory_space<vmem>>, vector<128x256xbf16>
    %cst = arith.constant dense<0.000000e+00> : vector<8x256xf32>
    %3 = tpu.matmul %1, %2, %cst {dimension_numbers = #tpu.dot_dimension_numbers<[1], [0], [0], [1], [0, 0, 1, 1], [], []>} : vector<8x128xbf16>, vector<128x256xbf16>, vector<8x256xf32> -> vector<8x256xf32>
    %c0_3 = arith.constant 0 : index
    %c0_4 = arith.constant 0 : index
    %4 = vector.load %arg5[%c0_3, %c0_4] : memref<1x1033xf32, #tpu.memory_space<vmem>>, vector<1x256xf32>
    %5 = vector.broadcast %4 : vector<1x256xf32> to vector<8x256xf32>
    %6 = arith.addf %3, %5 : vector<8x256xf32>
    %cst_5 = arith.constant 0.000000e+00 : f32
    %7 = vector.broadcast %cst_5 : f32 to vector<8x256xf32>
    %8 = arith.maximumf %6, %7 : vector<8x256xf32>
    %9 = arith.truncf %8 : vector<8x256xf32> to vector<8x256xbf16>
    %c128 = arith.constant 128 : index
    %c0_6 = arith.constant 0 : index
    %10 = vector.load %arg2[%c128, %c0_6] : memref<384x256xbf16, #tpu.memory_space<vmem>>, vector<256x256xbf16>
    %cst_7 = arith.constant dense<0.000000e+00> : vector<8x256xf32>
    %11 = tpu.matmul %9, %10, %cst_7 {dimension_numbers = #tpu.dot_dimension_numbers<[1], [0], [0], [1], [0, 0, 1, 1], [], []>} : vector<8x256xbf16>, vector<256x256xbf16>, vector<8x256xf32> -> vector<8x256xf32>
    %c0_8 = arith.constant 0 : index
    %c256 = arith.constant 256 : index
    %12 = vector.load %arg5[%c0_8, %c256] : memref<1x1033xf32, #tpu.memory_space<vmem>>, vector<1x256xf32>
    %13 = vector.broadcast %12 : vector<1x256xf32> to vector<8x256xf32>
    %14 = arith.addf %11, %13 : vector<8x256xf32>
    %cst_9 = arith.constant 0.000000e+00 : f32
    %15 = vector.broadcast %cst_9 : f32 to vector<8x256xf32>
    %16 = arith.maximumf %14, %15 : vector<8x256xf32>
    %17 = arith.truncf %16 : vector<8x256xf32> to vector<8x256xbf16>
    %c0_10 = arith.constant 0 : index
    %c0_11 = arith.constant 0 : index
    %18 = vector.load %arg3[%c0_10, %c0_11] : memref<256x512xbf16, #tpu.memory_space<vmem>>, vector<256x512xbf16>
    %cst_12 = arith.constant dense<0.000000e+00> : vector<8x512xf32>
    %19 = tpu.matmul %17, %18, %cst_12 {dimension_numbers = #tpu.dot_dimension_numbers<[1], [0], [0], [1], [0, 0, 1, 1], [], []>} : vector<8x256xbf16>, vector<256x512xbf16>, vector<8x512xf32> -> vector<8x512xf32>
    %c0_13 = arith.constant 0 : index
    %c512 = arith.constant 512 : index
    %20 = vector.load %arg5[%c0_13, %c512] : memref<1x1033xf32, #tpu.memory_space<vmem>>, vector<1x512xf32>
    %21 = vector.broadcast %20 : vector<1x512xf32> to vector<8x512xf32>
    %22 = arith.addf %19, %21 : vector<8x512xf32>
    %cst_14 = arith.constant 0.000000e+00 : f32
    %23 = vector.broadcast %cst_14 : f32 to vector<8x512xf32>
    %24 = arith.maximumf %22, %23 : vector<8x512xf32>
    %25 = arith.truncf %24 : vector<8x512xf32> to vector<8x512xbf16>
    %c0_15 = arith.constant 0 : index
    %c0_16 = arith.constant 0 : index
    %26 = vector.load %arg4[%c0_15, %c0_16] : memref<512x9xbf16, #tpu.memory_space<vmem>>, vector<512x9xbf16>
    %cst_17 = arith.constant dense<0.000000e+00> : vector<8x9xf32>
    %27 = tpu.matmul %25, %26, %cst_17 {dimension_numbers = #tpu.dot_dimension_numbers<[1], [0], [0], [1], [0, 0, 1, 1], [], []>} : vector<8x512xbf16>, vector<512x9xbf16>, vector<8x9xf32> -> vector<8x9xf32>
    %c0_18 = arith.constant 0 : index
    %c1024 = arith.constant 1024 : index
    %28 = vector.load %arg5[%c0_18, %c1024] : memref<1x1033xf32, #tpu.memory_space<vmem>>, vector<1x9xf32>
    %29 = vector.broadcast %28 : vector<1x9xf32> to vector<8x9xf32>
    %30 = arith.addf %27, %29 : vector<8x9xf32>
    %31 = vector.extract_strided_slice %30 {offsets = [0, 0], sizes = [8, 8], strides = [1, 1]} : vector<8x9xf32> to vector<8x8xf32>
    %32 = vector.extract_strided_slice %30 {offsets = [0, 8], sizes = [8, 1], strides = [1, 1]} : vector<8x9xf32> to vector<8x1xf32>
    %33 = vector.broadcast %32 : vector<8x1xf32> to vector<8x8xf32>
    %34 = arith.addf %33, %31 : vector<8x8xf32>
    %cst_19 = arith.constant dense<0.000000e+00> : vector<8xf32>
    %35 = vector.multi_reduction <add>, %31, %cst_19 [1] : vector<8x8xf32> to vector<8xf32>
    %36 = vector.shape_cast %35 : vector<8xf32> to vector<8x1xf32>
    %cst_20 = arith.constant 8.000000e+00 : f32
    %37 = vector.broadcast %cst_20 : f32 to vector<8x1xf32>
    %38 = arith.divf %36, %37 : vector<8x1xf32>
    %39 = vector.broadcast %38 : vector<8x1xf32> to vector<8x8xf32>
    %40 = arith.subf %34, %39 : vector<8x8xf32>
    %c0_21 = arith.constant 0 : index
    %c0_22 = arith.constant 0 : index
    %41 = vector.load %arg6[%c0_21, %c0_22] : memref<8x8xf32, #tpu.memory_space<vmem>>, vector<8x8xf32>
    tpu.vector_store %arg6[%c0_21, %c0_22], %40 {strides = array<i32>} : memref<8x8xf32, #tpu.memory_space<vmem>>, vector<8x8xf32>,
    return
  }
  func.func @transform_0(%arg0: i32) -> (i32, i32) {
    %c0_i32 = arith.constant 0 : i32
    %c0_i32_0 = arith.constant 0 : i32
    return %arg0, %c0_i32 : i32, i32
  }
  func.func @transform_1(%arg0: i32) -> (i32, i32) {
    %c0_i32 = arith.constant 0 : i32
    %c0_i32_0 = arith.constant 0 : i32
    %c0_i32_1 = arith.constant 0 : i32
    return %c0_i32, %c0_i32_0 : i32, i32
  }
  func.func @transform_2(%arg0: i32) -> (i32, i32) {
    %c0_i32 = arith.constant 0 : i32
    %c0_i32_0 = arith.constant 0 : i32
    %c0_i32_1 = arith.constant 0 : i32
    return %c0_i32, %c0_i32_0 : i32, i32
  }
  func.func @transform_3(%arg0: i32) -> (i32, i32) {
    %c0_i32 = arith.constant 0 : i32
    %c0_i32_0 = arith.constant 0 : i32
    %c0_i32_1 = arith.constant 0 : i32
    return %c0_i32, %c0_i32_0 : i32, i32
  }
  func.func @transform_4(%arg0: i32) -> (i32, i32) {
    %c0_i32 = arith.constant 0 : i32
    %c0_i32_0 = arith.constant 0 : i32
    %c0_i32_1 = arith.constant 0 : i32
    return %c0_i32, %c0_i32_0 : i32, i32
  }
  func.func @transform_5(%arg0: i32) -> (i32, i32) {
    %c0_i32 = arith.constant 0 : i32
    %c0_i32_0 = arith.constant 0 : i32
    return %arg0, %c0_i32 : i32, i32
  }
}

</mosaic_0001>

<bundles_post_ra>
// kernel: tpu_custom_call.1
= control target key start
LH: loop header
LB: loop body
LE: loop exit
PB: predicated region body
PF: predicated region fallthrough
CT: control target
= control target key end

     0   :  { %10 = vsyncpa [#allocation3], 0  ;;  %s1963_s0 = inlined_call_operand.vmem [shape: f32[8,128], index: 0, kind: input, shape index: {}]   ;;  %s1964_s1 = inlined_call_operand.hbm [shape: bf16[384,256], index: 1, kind: input, shape index: {}]   ;;  %s1965_s2 = inlined_call_operand.hbm [shape: bf16[256,512], index: 2, kind: input, shape index: {}]   ;;  %s1966_s3 = inlined_call_operand.vmem [shape: bf16[512,9], index: 3, kind: input, shape index: {}]   ;;  %s1967_s4 = inlined_call_operand.vmem [shape: f32[1,1033], index: 4, kind: input, shape index: {}]   ;;  %s1968_s5 = inlined_call_operand.hbm [shape: f32[8,8], index: 5, kind: output, shape index: {}]  }
   0x1   :  { %11 = vsyncpa [#allocation6], 0 }
   0x2   :  { %12 = vsyncpa [#allocation4], 0  ;;  %s1788_s18 = smov [#allocation2]  }
   0x3   :  { %s20_s19 = sshll.u32 %s1788_s18, 4  ;;  %s21_s19 = int_to_ptr.vmem [resolvable:$true] %s20_s19 }
   0x4   :  { %s1730_s20 = scalar_lea.vmem %s21_s19, 6144  ;;  %p1735_p1 = scmp.lt.s32.totalorder %s21_s19, %s21_s19 }
   0x5   :  { %p1731_p0 = scmp.ne.s32.totalorder %s21_s19, %s1730_s20  ;;  %p1736_p2 = scmp.lt.s32.totalorder %s1730_s20, %s1730_s20 }
   0x7   :  { %p1737_p3 = por %p1736_p2, %p1735_p1 }
   0x9   :  { %p1738_p4 = pnand %p1737_p3, %p1731_p0 }
   0xb   :  { %1741 = shalt.err (!%p1738_p4)
}
   0xc   :  { %s1789_s21 = smov 128   ;;  %s1790_s22 = smov 8  }
   0xd   :  { %26 = dma.hbm_to_vmem [thread:$0]  %s1964_s1, 6144, %s21_s19, [#allocation3], %s1789_s21, %s1789_s21, %s1790_s22  }
   0xe   :  { %s1791_s25 = smov [#allocation5]  }
   0xf   :  { %s32_s26 = sshll.u32 %s1791_s25, 4  ;;  %s33_s26 = int_to_ptr.vmem [resolvable:$true] %s32_s26 }
  0x10   :  { %s1750_s27 = scalar_lea.vmem %s33_s26, 8192  ;;  %p1755_p6 = scmp.lt.s32.totalorder %s33_s26, %s33_s26 }
  0x11   :  { %p1751_p5 = scmp.ne.s32.totalorder %s33_s26, %s1750_s27  ;;  %p1756_p7 = scmp.lt.s32.totalorder %s1750_s27, %s1750_s27 }
  0x13   :  { %p1757_p8 = por %p1756_p7, %p1755_p6 }
  0x15   :  { %p1758_p9 = pnand %p1757_p8, %p1751_p5 }
  0x17   :  { %1761 = shalt.err (!%p1758_p9)
}
  0x18   :  { %s1792_s28 = smov 256   ;;  %s1793_s29 = smov 16  }
  0x19   :  { %38 = dma.hbm_to_vmem [thread:$0]  %s1965_s2, 8192, %s33_s26, [#allocation6], %s1792_s28, %s1792_s28, %s1793_s29  }
  0x1a   :  { %1782 = dma.done.wait [#allocation3], 6144  }
  0x1b   :  { %1783 = vsyncadd [#allocation3], 4294961152 }
  0x1c   :  { %1784 = dma.done.wait [#allocation6], 8192  }
  0x1d   :  { %1785 = vsyncadd [#allocation6], 4294959104  ;;  %v1794_v0 = vmov 0   ;;  %v1522_v1 = vld [vmem:[#allocation2 + $0x74] ss:$8 sps:$4 sm:$0xff]   ;;  %v50_v26 = vld [vmem:[%s1963_s0] sm:$0xff] }
  0x1e   :  { %192 = vmatprep.mubr.bf16.mxu0 %v1794_v0  ;;  %v1524_v2 = vld [vmem:[#allocation2 + $0x70] ss:$8 sps:$4 sm:$0xff]   ;;  %160 = vmatprep.subr.bf16.mxu0 %v1522_v1  ;;  %v1525_v3 = vld [vmem:[#allocation2 + $0x64] ss:$8 sps:$4 sm:$0xff]   ;;  %v1527_v4 = vld [vmem:[#allocation2 + $0x60] ss:$8 sps:$4 sm:$0xff]   ;;  %v51_v31 = vpack.c.bf16 %v50_v26, %v50_v26 }
  0x1f   :  { %161 = vmatpush1.bf16.msra.mxu0 %v1524_v2  ;;  %v1528_v5 = vld [vmem:[#allocation2 + $0x54] ss:$8 sps:$4 sm:$0xff]   ;;  %v1530_v6 = vld [vmem:[#allocation2 + $0x50] ss:$8 sps:$4 sm:$0xff]   ;;  %v1531_v7 = vld [vmem:[#allocation2 + $0x44] ss:$8 sps:$4 sm:$0xff]  }
  0x20   :  { %162 = vmatprep.subr.bf16.mxu0 %v1525_v3  ;;  %v1533_v8 = vld [vmem:[#allocation2 + $0x40] ss:$8 sps:$4 sm:$0xff]   ;;  %v1534_v9 = vld [vmem:[#allocation2 + $0x34] ss:$8 sps:$4 sm:$0xff]   ;;  %v1548_v11 = vld [vmem:[#allocation2 + $0xf0] ss:$8 sps:$4 sm:$0xff]  }
  0x21   :  { %v1546_v10 = vld [vmem:[#allocation2 + $0xf4] ss:$8 sps:$4 sm:$0xff]   ;;  %v1549_v12 = vld [vmem:[#allocation2 + $0xe4] ss:$8 sps:$4 sm:$0xff]   ;;  %v1536_v13 = vld [vmem:[#allocation2 + $0x30] ss:$8 sps:$4 sm:$0xff]  }
  0x22   :  { %409 = vmatprep.subr.bf16.mxu1 %v1546_v10  ;;  %v1551_v14 = vld [vmem:[#allocation2 + $0xe0] ss:$8 sps:$4 sm:$0xff]   ;;  %v1552_v15 = vld [vmem:[#allocation2 + $0xd4] ss:$8 sps:$4 sm:$0xff]   ;;  %v1537_v16 = vld [vmem:[#allocation2 + $0x24] ss:$8 sps:$4 sm:$0xff]  }
  0x23   :  { %163 = vmatpush1.bf16.msra.mxu0 %v1527_v4  ;;  %410 = vmatpush1.bf16.msra.mxu1 %v1548_v11  ;;  %v1539_v17 = vld [vmem:[#allocation2 + $0x20] ss:$8 sps:$4 sm:$0xff]   ;;  %v1554_v18 = vld [vmem:[#allocation2 + $0xd0] ss:$8 sps:$4 sm:$0xff]   ;;  %v1555_v19 = vld [vmem:[#allocation2 + $0xc4] ss:$8 sps:$4 sm:$0xff]  }
  0x24   :  { %164 = vmatprep.subr.bf16.mxu0 %v1528_v5  ;;  %411 = vmatprep.subr.bf16.mxu1 %v1549_v12  ;;  %v1540_v20 = vld [vmem:[#allocation2 + $0x14] ss:$8 sps:$4 sm:$0xff]   ;;  %v1542_v21 = vld [vmem:[#allocation2 + $0x10] ss:$8 sps:$4 sm:$0xff]   ;;  %v1557_v22 = vld [vmem:[#allocation2 + $0xc0] ss:$8 sps:$4 sm:$0xff]  }
  0x25   :  { %v1558_v23 = vld [vmem:[#allocation2 + $0xb4] ss:$8 sps:$4 sm:$0xff]   ;;  %v1543_v24 = vld [vmem:[#allocation2 + $0x4] ss:$8 sps:$4 sm:$0xff]   ;;  %v1545_v25 = vld [vmem:[#allocation2] ss:$8 sps:$4 sm:$0xff]  }
  0x26   :  { %v1560_v27 = vld [vmem:[#allocation2 + $0xb0] ss:$8 sps:$4 sm:$0xff]   ;;  %v1561_v28 = vld [vmem:[#allocation2 + $0xa4] ss:$8 sps:$4 sm:$0xff]   ;;  %v1563_v29 = vld [vmem:[#allocation2 + $0xa0] ss:$8 sps:$4 sm:$0xff]  }
  0x27   :  { %165 = vmatpush1.bf16.msra.mxu0 %v1530_v6  ;;  %412 = vmatpush1.bf16.msra.mxu1 %v1551_v14  ;;  %v1564_v30 = vld [vmem:[#allocation2 + $0x94] ss:$8 sps:$4 sm:$0xff]   ;;  %v1566_v32 = vld [vmem:[#allocation2 + $0x90] ss:$8 sps:$4 sm:$0xff]   ;;  %v1567_v33 = vld [vmem:[#allocation2 + $0x84] ss:$8 sps:$4 sm:$0xff]  }
  0x28   :  { %166 = vmatprep.subr.bf16.mxu0 %v1531_v7  ;;  %413 = vmatprep.subr.bf16.mxu1 %v1552_v15  ;;  %v1569_v34 = vld [vmem:[#allocation2 + $0x80] ss:$8 sps:$4 sm:$0xff]   ;;  %v1570_v35 = vld [vmem:[#allocation2 + $0x174] ss:$8 sps:$4 sm:$0xff]   ;;  %v1572_v36 = vld [vmem:[#allocation2 + $0x170] ss:$8 sps:$4 sm:$0xff]  }
  0x29   :  { %v1573_v37 = vld [vmem:[#allocation2 + $0x164] ss:$8 sps:$4 sm:$0xff]   ;;  %v1575_v38 = vld [vmem:[#allocation2 + $0x160] ss:$8 sps:$4 sm:$0xff]   ;;  %v1576_v39 = vld [vmem:[#allocation2 + $0x154] ss:$8 sps:$4 sm:$0xff]  }
  0x2a   :  { %v1578_v40 = vld [vmem:[#allocation2 + $0x150] ss:$8 sps:$4 sm:$0xff]   ;;  %v1579_v41 = vld [vmem:[#allocation2 + $0x144] ss:$8 sps:$4 sm:$0xff]   ;;  %v1581_v42 = vld [vmem:[#allocation2 + $0x140] ss:$8 sps:$4 sm:$0xff]  }
  0x2b   :  { %167 = vmatpush1.bf16.msra.mxu0 %v1533_v8  ;;  %414 = vmatpush1.bf16.msra.mxu1 %v1554_v18  ;;  %v1582_v43 = vld [vmem:[#allocation2 + $0x134] ss:$8 sps:$4 sm:$0xff]   ;;  %v1584_v44 = vld [vmem:[#allocation2 + $0x130] ss:$8 sps:$4 sm:$0xff]   ;;  %v1585_v45 = vld [vmem:[#allocation2 + $0x124] ss:$8 sps:$4 sm:$0xff]  }
  0x2c   :  { %168 = vmatprep.subr.bf16.mxu0 %v1534_v9  ;;  %415 = vmatprep.subr.bf16.mxu1 %v1555_v19  ;;  %v1587_v46 = vld [vmem:[#allocation2 + $0x120] ss:$8 sps:$4 sm:$0xff]   ;;  %v1588_v47 = vld [vmem:[#allocation2 + $0x114] ss:$8 sps:$4 sm:$0xff]   ;;  %v1590_v48 = vld [vmem:[#allocation2 + $0x110] ss:$8 sps:$4 sm:$0xff]  }
  0x2d   :  { %v1591_v49 = vld [vmem:[#allocation2 + $0x104] ss:$8 sps:$4 sm:$0xff]   ;;  %v1593_v50 = vld [vmem:[#allocation2 + $0x100] ss:$8 sps:$4 sm:$0xff]   ;;  %vm1299_vm0 = vcmask 64512  }
  0x2e   :  { %v1594_v51 = vld [vmem:[#allocation5 + $0xe0] ss:$16 sps:$4 sm:$0xff]   ;;  %v1596_v52 = vld [vmem:[#allocation5 + $0xe4] ss:$16 sps:$4 sm:$0xff]   ;;  %v1599_v53 = vld [vmem:[#allocation5 + $0xec] ss:$16 sps:$4 sm:$0xff]  }
  0x2f   :  { %169 = vmatpush1.bf16.msra.mxu0 %v1536_v13  ;;  %416 = vmatpush1.bf16.msra.mxu1 %v1557_v22  ;;  %v1602_v54 = vld [vmem:[#allocation5 + $0xc4] ss:$16 sps:$4 sm:$0xff]   ;;  %v1600_v55 = vld [vmem:[#allocation5 + $0xc0] ss:$16 sps:$4 sm:$0xff]  }
  0x30   :  { %170 = vmatprep.subr.bf16.mxu0 %v1537_v16  ;;  %417 = vmatprep.subr.bf16.mxu1 %v1558_v23  ;;  %v1608_v56 = vld [vmem:[#allocation5 + $0xa4] ss:$16 sps:$4 sm:$0xff]   ;;  %v1606_v57 = vld [vmem:[#allocation5 + $0xa0] ss:$16 sps:$4 sm:$0xff]   ;;  %v70_v16 = vlaneseq }
  0x31   :  { %v1614_v58 = vld [vmem:[#allocation5 + $0x84] ss:$16 sps:$4 sm:$0xff]   ;;  %v1612_v59 = vld [vmem:[#allocation5 + $0x80] ss:$16 sps:$4 sm:$0xff]  }
  0x32   :  { %v1620_v60 = vld [vmem:[#allocation5 + $0x64] ss:$16 sps:$4 sm:$0xff]   ;;  %v1618_v61 = vld [vmem:[#allocation5 + $0x60] ss:$16 sps:$4 sm:$0xff]  }
  0x33   :  { %171 = vmatpush1.bf16.msra.mxu0 %v1539_v17  ;;  %418 = vmatpush1.bf16.msra.mxu1 %v1560_v27  ;;  %v1626_v62 = vld [vmem:[#allocation5 + $0x44] ss:$16 sps:$4 sm:$0xff]   ;;  %v1624_v63 = vld [vmem:[#allocation5 + $0x40] ss:$16 sps:$4 sm:$0xff]   ;;  %v1836_v17 = vshrl.u32 %v70_v16, 7 }
  0x34   :  { %172 = vmatprep.subr.bf16.mxu0 %v1540_v20  ;;  %419 = vmatprep.subr.bf16.mxu1 %v1561_v28  ;;  %v1632_v0 = vld [vmem:[#allocation5 + $0x24] ss:$16 sps:$4 sm:$0xff]   ;;  %v1630_v1 = vld [vmem:[#allocation5 + $0x20] ss:$16 sps:$4 sm:$0xff]  }
  0x35   :  { %v1638_v2 = vld [vmem:[#allocation5 + $0x4] ss:$16 sps:$4 sm:$0xff]   ;;  %v1636_v3 = vld [vmem:[#allocation5] ss:$16 sps:$4 sm:$0xff]   ;;  %v1839_v18 = vsub.s32 0, %v1836_v17  ;;  %v1845_v20 = vsub.s32 1, %v1836_v17 }
  0x36   :  { %v1644_v4 = vld [vmem:[#allocation5 + $0x1e4] ss:$16 sps:$4 sm:$0xff]   ;;  %v1642_v5 = vld [vmem:[#allocation5 + $0x1e0] ss:$16 sps:$4 sm:$0xff]  }
  0x37   :  { %173 = vmatpush1.bf16.msra.mxu0 %v1542_v21  ;;  %420 = vmatpush1.bf16.msra.mxu1 %v1563_v29  ;;  %v1650_v6 = vld [vmem:[#allocation5 + $0x1c4] ss:$16 sps:$4 sm:$0xff]   ;;  %v1648_v7 = vld [vmem:[#allocation5 + $0x1c0] ss:$16 sps:$4 sm:$0xff]  }
  0x38   :  { %174 = vmatprep.subr.bf16.mxu0 %v1543_v24  ;;  %421 = vmatprep.subr.bf16.mxu1 %v1564_v30  ;;  %v1656_v8 = vld [vmem:[#allocation5 + $0x1a4] ss:$16 sps:$4 sm:$0xff]   ;;  %v1654_v9 = vld [vmem:[#allocation5 + $0x1a0] ss:$16 sps:$4 sm:$0xff]  }
  0x39   :  { %v1662_v10 = vld [vmem:[#allocation5 + $0x184] ss:$16 sps:$4 sm:$0xff]   ;;  %v1660_v11 = vld [vmem:[#allocation5 + $0x180] ss:$16 sps:$4 sm:$0xff]  }
  0x3a   :  { %v1668_v12 = vld [vmem:[#allocation5 + $0x164] ss:$16 sps:$4 sm:$0xff]   ;;  %v1666_v13 = vld [vmem:[#allocation5 + $0x160] ss:$16 sps:$4 sm:$0xff]  }
  0x3b   :  { %175 = vmatpush1.bf16.msra.mxu0 %v1545_v25  ;;  %422 = vmatpush1.bf16.msra.mxu1 %v1566_v32  ;;  %v1674_v14 = vld [vmem:[#allocation5 + $0x144] ss:$16 sps:$4 sm:$0xff]   ;;  %v1672_v15 = vld [vmem:[#allocation5 + $0x140] ss:$16 sps:$4 sm:$0xff]   ;;  %v1597_v32 = vld [vmem:[#allocation5 + $0xe8] ss:$16 sps:$4 sm:$0xff]  }
  0x3c   :  { %423 = vmatprep.subr.bf16.mxu1 %v1567_v33  ;;  %860 = vmatprep.subr.bf16.mxu0 %v1596_v52  ;;  %v68_v19 = vld [vmem:[%s1967_s4] sm:$0x3]  ;;  %v1659_v52 = vld [vmem:[#allocation5 + $0x1ac] ss:$16 sps:$4 sm:$0xff]  }
  0x3d   :  { %v73_v21 = vrot.slane %v68_v19, %v1839_v18  ;;  %v77_v22 = vrot.slane %v68_v19, %v1845_v20  ;;  %v1691_v19 = vld [vmem:[%s1966_s3 + $0x38] sm:$0xff]  }
  0x3e   :  { %193 = vmatmul.mubr.bf16.vlgmr.msra.gmra.mxu0 %v51_v31 }
  0x3f   :  { %424 = vmatpush1.bf16.msra.mxu1 %v1569_v34  ;;  %861 = vmatpush1.bf16.msra.mxu0 %v1594_v51  ;;  %v1605_v34 = vld [vmem:[#allocation5 + $0xcc] ss:$16 sps:$4 sm:$0xff]   ;;  %v1651_v51 = vld [vmem:[#allocation5 + $0x1c8] ss:$16 sps:$4 sm:$0xff]  }
  0x40   :  { %425 = vmatprep.subr.bf16.mxu1 %v1570_v35  ;;  %862 = vmatprep.subr.bf16.mxu0 %v1602_v54  ;;  %v1603_v35 = vld [vmem:[#allocation5 + $0xc8] ss:$16 sps:$4 sm:$0xff]   ;;  %v1665_v54 = vld [vmem:[#allocation5 + $0x18c] ss:$16 sps:$4 sm:$0xff]  }
  0x43   :  { %426 = vmatpush2.bf16.msra.mxu1 %v1572_v36  ;;  %863 = vmatpush1.bf16.msra.mxu0 %v1600_v55  ;;  %v1611_v36 = vld [vmem:[#allocation5 + $0xac] ss:$16 sps:$4 sm:$0xff]   ;;  %v1663_v55 = vld [vmem:[#allocation5 + $0x188] ss:$16 sps:$4 sm:$0xff]  }
  0x44   :  { %427 = vmatprep.subr.bf16.mxu1 %v1573_v37  ;;  %864 = vmatprep.subr.bf16.mxu0 %v1608_v56  ;;  %v1609_v37 = vld [vmem:[#allocation5 + $0xa8] ss:$16 sps:$4 sm:$0xff]   ;;  %v1671_v56 = vld [vmem:[#allocation5 + $0x16c] ss:$16 sps:$4 sm:$0xff]  }
  0x47   :  { %428 = vmatpush2.bf16.msra.mxu1 %v1575_v38  ;;  %865 = vmatpush1.bf16.msra.mxu0 %v1606_v57  ;;  %v1617_v38 = vld [vmem:[#allocation5 + $0x8c] ss:$16 sps:$4 sm:$0xff]   ;;  %v1669_v57 = vld [vmem:[#allocation5 + $0x168] ss:$16 sps:$4 sm:$0xff]  }
  0x48   :  { %429 = vmatprep.subr.bf16.mxu1 %v1576_v39  ;;  %866 = vmatprep.subr.bf16.mxu0 %v1614_v58  ;;  %v1615_v39 = vld [vmem:[#allocation5 + $0x88] ss:$16 sps:$4 sm:$0xff]   ;;  %v1677_v58 = vld [vmem:[#allocation5 + $0x14c] ss:$16 sps:$4 sm:$0xff]  }
  0x4b   :  { %430 = vmatpush2.bf16.msra.mxu1 %v1578_v40  ;;  %867 = vmatpush1.bf16.msra.mxu0 %v1612_v59  ;;  %v1623_v40 = vld [vmem:[#allocation5 + $0x6c] ss:$16 sps:$4 sm:$0xff]   ;;  %v1675_v59 = vld [vmem:[#allocation5 + $0x148] ss:$16 sps:$4 sm:$0xff]  }
  0x4c   :  { %431 = vmatprep.subr.bf16.mxu1 %v1579_v41  ;;  %868 = vmatprep.subr.bf16.mxu0 %v1620_v60  ;;  %v1621_v41 = vld [vmem:[#allocation5 + $0x68] ss:$16 sps:$4 sm:$0xff]   ;;  %v1680_v60 = vld [vmem:[#allocation5 + $0x124] ss:$16 sps:$4 sm:$0xff]  }
  0x4f   :  { %432 = vmatpush2.bf16.msra.mxu1 %v1581_v42  ;;  %869 = vmatpush1.bf16.msra.mxu0 %v1618_v61  ;;  %v1629_v42 = vld [vmem:[#allocation5 + $0x4c] ss:$16 sps:$4 sm:$0xff]  }
  0x50   :  { %433 = vmatprep.subr.bf16.mxu1 %v1582_v43  ;;  %870 = vmatprep.subr.bf16.mxu0 %v1626_v62  ;;  %v1627_v43 = vld [vmem:[#allocation5 + $0x48] ss:$16 sps:$4 sm:$0xff]   ;;  %v1683_v61 = vld [vmem:[#allocation5 + $0x12c] ss:$16 sps:$4 sm:$0xff]   ;;  %v1678_v62 = vld [vmem:[#allocation5 + $0x120] ss:$16 sps:$4 sm:$0xff]  }
  0x53   :  { %434 = vmatpush2.bf16.msra.mxu1 %v1584_v44  ;;  %871 = vmatpush1.bf16.msra.mxu0 %v1624_v63  ;;  %v1635_v44 = vld [vmem:[#allocation5 + $0x2c] ss:$16 sps:$4 sm:$0xff]   ;;  %v1681_v63 = vld [vmem:[#allocation5 + $0x128] ss:$16 sps:$4 sm:$0xff]  }
  0x54   :  { %435 = vmatprep.subr.bf16.mxu1 %v1585_v45  ;;  %872 = vmatprep.subr.bf16.mxu0 %v1632_v0  ;;  %v1633_v45 = vld [vmem:[#allocation5 + $0x28] ss:$16 sps:$4 sm:$0xff]   ;;  %v1686_v0 = vld [vmem:[#allocation5 + $0x104] ss:$16 sps:$4 sm:$0xff]  }
  0x57   :  { %436 = vmatpush2.bf16.msra.mxu1 %v1587_v46  ;;  %873 = vmatpush1.bf16.msra.mxu0 %v1630_v1  ;;  %v1641_v46 = vld [vmem:[#allocation5 + $0xc] ss:$16 sps:$4 sm:$0xff]  }
  0x58   :  { %437 = vmatprep.subr.bf16.mxu1 %v1588_v47  ;;  %874 = vmatprep.subr.bf16.mxu0 %v1638_v2  ;;  %v1639_v47 = vld [vmem:[#allocation5 + $0x8] ss:$16 sps:$4 sm:$0xff]   ;;  %v1689_v1 = vld [vmem:[#allocation5 + $0x10c] ss:$16 sps:$4 sm:$0xff]   ;;  %v1684_v2 = vld [vmem:[#allocation5 + $0x100] ss:$16 sps:$4 sm:$0xff]  }
  0x5b   :  { %438 = vmatpush2.bf16.msra.mxu1 %v1590_v48  ;;  %875 = vmatpush1.bf16.msra.mxu0 %v1636_v3  ;;  %v1647_v48 = vld [vmem:[#allocation5 + $0x1ec] ss:$16 sps:$4 sm:$0xff]   ;;  %v1687_v3 = vld [vmem:[#allocation5 + $0x108] ss:$16 sps:$4 sm:$0xff]  }
  0x5c   :  { %439 = vmatprep.subr.bf16.mxu1 %v1591_v49  ;;  %876 = vmatprep.subr.bf16.mxu0 %v1644_v4  ;;  %v1645_v49 = vld [vmem:[#allocation5 + $0x1e8] ss:$16 sps:$4 sm:$0xff]  }
  0x5d   :  { %v1690_v4 = vld [vmem:[%s1966_s3 + $0x78] sm:$0xff]  }
  0x5f   :  { %440 = vmatpush2.bf16.msra.mxu1 %v1593_v50  ;;  %877 = vmatpush2.bf16.msra.mxu0 %v1642_v5  ;;  %v1653_v50 = vld [vmem:[#allocation5 + $0x1cc] ss:$16 sps:$4 sm:$0xff]   ;;  %v237_v5 = vld [vmem:[%s1967_s4 + $0x2] sm:$0x3] }
  0x60   :  { %901 = vmatprep.subr.bf16.mxu1 %v1599_v53  ;;  %878 = vmatprep.subr.bf16.mxu0 %v1650_v6  ;;  %v1657_v53 = vld [vmem:[#allocation5 + $0x1a8] ss:$16 sps:$4 sm:$0xff]   ;;  %v242_v6 = vrot.slane %v237_v5, %v1839_v18 }
  0x63   :  { %879 = vmatpush2.bf16.msra.mxu0 %v1648_v7  ;;  %v246_v7 = vrot.slane %v237_v5, %v1845_v20 }
  0x64   :  { %880 = vmatprep.subr.bf16.mxu0 %v1656_v8 }
  0x67   :  { %881 = vmatpush2.bf16.msra.mxu0 %v1654_v9 }
  0x68   :  { %882 = vmatprep.subr.bf16.mxu0 %v1662_v10 }
  0x6b   :  { %883 = vmatpush2.bf16.msra.mxu0 %v1660_v11 }
  0x6c   :  { %884 = vmatprep.subr.bf16.mxu0 %v1668_v12 }
  0x6f   :  { %885 = vmatpush2.bf16.msra.mxu0 %v1666_v13 }
  0x70   :  { %886 = vmatprep.subr.bf16.mxu0 %v1674_v14 }
  0x73   :  { %887 = vmatpush2.bf16.msra.mxu0 %v1672_v15 }
  0x74   :  { %888 = vmatprep.subr.bf16.mxu0 %v1680_v60  ;;  %v1710_v60 = vld [vmem:[%s1966_s3 + $0xe8] sm:$0xff]  }
  0x77   :  { %889 = vmatpush2.bf16.msra.mxu0 %v1678_v62  ;;  %v1712_v62 = vld [vmem:[%s1966_s3 + $0xe0] sm:$0xff]  }
  0x78   :  { %890 = vmatprep.subr.bf16.mxu0 %v1686_v0  ;;  %v1714_v0 = vld [vmem:[%s1966_s3 + $0xd8] sm:$0xff]  }
  0x7b   :  { %891 = vmatpush2.bf16.msra.mxu0 %v1684_v2  ;;  %v530_v2 = vsub.s32 2, %v1836_v17 }
  0x7c   :  { %1468 = vmatprep.subr.bf16.mxu0 %v1690_v4  ;;  %v1717_v4 = vld [vmem:[%s1966_s3 + $0x90] sm:$0xff]  }
  0xfe   :  { %v194_v23 = vpop.f32.mrf.mxu0 }
  0xff   :  { %v195_v24 = vadd.f32 %v194_v23, %v73_v21  ;;  %v1693_v23 = vld [vmem:[%s1966_s3 + $0x30] sm:$0xff]  }
 0x100   :  { %v196_v25 = vpop.f32.mrf.mxu0 }
 0x101   :  { %v197_v26 = vadd.f32 %v196_v25, %v77_v22  ;;  %v201_v27 = vmax.f32 %v195_v24, 0.0  ;;  %v1692_v22 = vld [vmem:[%s1966_s3 + $0x70] sm:$0xff]   ;;  %v1694_v24 = vld [vmem:[%s1966_s3 + $0x68] sm:$0xff]  }
 0x102   :  { %v198_v28 = vpop.f32.mrf.mxu0  ;;  %v1695_v25 = vld [vmem:[%s1966_s3 + $0x28] sm:$0xff]  }
 0x103   :  { %v202_v29 = vmax.f32 %v197_v26, 0.0  ;;  %v203_v33 = vpack.c.bf16 %v201_v27, %v201_v27  ;;  %v1696_v26 = vld [vmem:[%s1966_s3 + $0x60] sm:$0xff]   ;;  %v1698_v28 = vld [vmem:[%s1966_s3 + $0x58] sm:$0xff]  }
 0x104   :  { %v199_v30 = vpop.f32.mrf.mxu0  ;;  %v1697_v27 = vld [vmem:[%s1966_s3 + $0x20] sm:$0xff]  }
 0x105   :  { %v204_v31 = vpack.c.bf16 %v202_v29, %v202_v29  ;;  %v1699_v29 = vld [vmem:[%s1966_s3 + $0x18] sm:$0xff]   ;;  %v1700_v30 = vld [vmem:[%s1966_s3 + $0x50] sm:$0xff]  }
 0x107   :  { %441 = vmatprep.mubr.bf16.mxu1 %v204_v31  ;;  %v1701_v31 = vld [vmem:[%s1966_s3 + $0x10] sm:$0xff]  }
 0x108   :  { %442 = vmatmul.mubr.bf16.vlgmr.msra.gmra.mxu1 %v203_v33  ;;  %v1703_v33 = vld [vmem:[%s1966_s3 + $0x8] sm:$0xff]  }
 0x109   :  { %902 = vmatpush1.bf16.msra.mxu1 %v1597_v32  ;;  %v1702_v32 = vld [vmem:[%s1966_s3 + $0x48] sm:$0xff]  }
 0x10a   :  { %903 = vmatprep.subr.bf16.mxu1 %v1605_v34  ;;  %v1704_v34 = vld [vmem:[%s1966_s3 + $0x40] sm:$0xff]  }
 0x10d   :  { %904 = vmatpush1.bf16.msra.mxu1 %v1603_v35  ;;  %v1705_v35 = vld [vmem:[%s1966_s3] sm:$0xff]  }
 0x10e   :  { %905 = vmatprep.subr.bf16.mxu1 %v1611_v36  ;;  %v1706_v36 = vld [vmem:[%s1966_s3 + $0xf8] sm:$0xff]  }
 0x111   :  { %906 = vmatpush1.bf16.msra.mxu1 %v1609_v37  ;;  %v518_v37 = vld [vmem:[%s1967_s4 + $0x4] sm:$0xf] }
 0x112   :  { %907 = vmatprep.subr.bf16.mxu1 %v1617_v38  ;;  %v534_v38 = vsub.s32 3, %v1836_v17  ;;  %v531_v5 = vrot.slane %v518_v37, %v530_v2  ;;  %v1719_v17 = vld [vmem:[%s1966_s3 + $0x88] sm:$0xff]  }
 0x115   :  { %908 = vmatpush1.bf16.msra.mxu1 %v1615_v39  ;;  %v523_v39 = vrot.slane %v518_v37, %v1839_v18  ;;  %v1707_v18 = vld [vmem:[%s1966_s3 + $0xb8] sm:$0xff]  }
 0x116   :  { %909 = vmatprep.subr.bf16.mxu1 %v1623_v40  ;;  %v527_v40 = vrot.slane %v518_v37, %v1845_v20 }
 0x119   :  { %910 = vmatpush1.bf16.msra.mxu1 %v1621_v41  ;;  %v535_v41 = vrot.slane %v518_v37, %v534_v38 }
 0x11a   :  { %911 = vmatprep.subr.bf16.mxu1 %v1629_v42 }
 0x11d   :  { %912 = vmatpush1.bf16.msra.mxu1 %v1627_v43 }
 0x11e   :  { %913 = vmatprep.subr.bf16.mxu1 %v1635_v44 }
 0x121   :  { %914 = vmatpush1.bf16.msra.mxu1 %v1633_v45 }
 0x122   :  { %915 = vmatprep.subr.bf16.mxu1 %v1641_v46 }
 0x125   :  { %916 = vmatpush1.bf16.msra.mxu1 %v1639_v47 }
 0x126   :  { %917 = vmatprep.subr.bf16.mxu1 %v1647_v48 }
 0x129   :  { %918 = vmatpush2.bf16.msra.mxu1 %v1645_v49 }
 0x12a   :  { %919 = vmatprep.subr.bf16.mxu1 %v1653_v50 }
 0x12d   :  { %920 = vmatpush2.bf16.msra.mxu1 %v1651_v51 }
 0x12e   :  { %921 = vmatprep.subr.bf16.mxu1 %v1659_v52 }
 0x131   :  { %922 = vmatpush2.bf16.msra.mxu1 %v1657_v53 }
 0x132   :  { %923 = vmatprep.subr.bf16.mxu1 %v1665_v54 }
 0x135   :  { %924 = vmatpush2.bf16.msra.mxu1 %v1663_v55 }
 0x136   :  { %925 = vmatprep.subr.bf16.mxu1 %v1671_v56 }
 0x139   :  { %926 = vmatpush2.bf16.msra.mxu1 %v1669_v57  ;;  %v1708_v57 = vld [vmem:[%s1966_s3 + $0xf0] sm:$0xff]  }
 0x13a   :  { %927 = vmatprep.subr.bf16.mxu1 %v1677_v58 }
 0x13d   :  { %928 = vmatpush2.bf16.msra.mxu1 %v1675_v59  ;;  %v1709_v59 = vld [vmem:[%s1966_s3 + $0xb0] sm:$0xff]  }
 0x13e   :  { %929 = vmatprep.subr.bf16.mxu1 %v1683_v61  ;;  %v1711_v61 = vld [vmem:[%s1966_s3 + $0xa8] sm:$0xff]  }
 0x141   :  { %930 = vmatpush2.bf16.msra.mxu1 %v1681_v63  ;;  %v1713_v63 = vld [vmem:[%s1966_s3 + $0xa0] sm:$0xff]  }
 0x142   :  { %931 = vmatprep.subr.bf16.mxu1 %v1689_v1  ;;  %v1715_v1 = vld [vmem:[%s1966_s3 + $0x98] sm:$0xff]  }
 0x145   :  { %932 = vmatpush2.bf16.msra.mxu1 %v1687_v3  ;;  %v1716_v3 = vld [vmem:[%s1966_s3 + $0xd0] sm:$0xff]  }
 0x1c8   :  { %v443_v8 = vpop.f32.mrf.mxu1 }
 0x1c9   :  { %v444_v9 = vadd.f32 %v443_v8, %v242_v6  ;;  %v1718_v6 = vld [vmem:[%s1966_s3 + $0xc8] sm:$0xff]   ;;  %v1720_v8 = vld [vmem:[%s1966_s3 + $0xc0] sm:$0xff]  }
 0x1ca   :  { %v445_v10 = vpop.f32.mrf.mxu1 }
 0x1cb   :  { %v446_v11 = vadd.f32 %v445_v10, %v246_v7  ;;  %v450_v12 = vmax.f32 %v444_v9, 0.0  ;;  %v1721_v9 = vld [vmem:[%s1966_s3 + $0x80] sm:$0xff]   ;;  %s1796_s3 = smov [#allocation7]  }
 0x1cc   :  { %v447_v13 = vpop.f32.mrf.mxu1  ;;  %s1313_s22 = sshll.u32 %s1796_s3, 4  ;;  %s1314_s22 = int_to_ptr.vmem [resolvable:$true] %s1313_s22 }
 0x1cd   :  { %v451_v14 = vmax.f32 %v446_v11, 0.0  ;;  %v452_v21 = vpack.c.bf16 %v450_v12, %v450_v12  ;;  %v1795_v12 = vmov 8   ;;  %p1767_p11 = scmp.lt.s32.totalorder %s1314_s22, %s1314_s22 }
 0x1ce   :  { %v448_v15 = vpop.f32.mrf.mxu1  ;;  %1521 = vset.pattern.permute.xlu0 %v1795_v12 }
 0x1cf   :  { %v453_v16 = vpack.c.bf16 %v451_v14, %v451_v14 }
 0x1d1   :  { %892 = vmatprep.mubr.bf16.mxu0 %v453_v16  ;;  %933 = vmatprep.mubr.bf16.mxu1 %v453_v16 }
 0x1d2   :  { %893 = vmatmul.mubr.bf16.vlgmr.msra.gmra.mxu0 %v452_v21  ;;  %934 = vmatmul.mubr.bf16.vlgmr.msra.gmra.mxu1 %v452_v21  ;;  %v1435_v21 = vld [vmem:[%s1967_s4 + $0x8] ss:$0 sm:$0xff]  ;;  %s1762_s4 = scalar_lea.vmem %s1314_s22, 128 }
 0x1d3   :  { %1469 = vmatpush3.bf16.msra.mxu0 %v1691_v19  ;;  %p1763_p10 = scmp.ne.s32.totalorder %s1314_s22, %s1762_s4  ;;  %p1768_p12 = scmp.lt.s32.totalorder %s1762_s4, %s1762_s4 }
 0x1d4   :  { %1470 = vmatprep.subr.bf16.mxu0 %v1692_v22 }
 0x1d5   :  { %p1769_p13 = por %p1768_p12, %p1767_p11 }
 0x1d7   :  { %1471 = vmatpush3.bf16.msra.mxu0 %v1693_v23  ;;  %p1770_p0 = pnand %p1769_p13, %p1763_p10 }
 0x1d8   :  { %1472 = vmatprep.subr.bf16.mxu0 %v1694_v24 }
 0x1db   :  { %1473 = vmatpush3.bf16.msra.mxu0 %v1695_v25 }
 0x1dc   :  { %1474 = vmatprep.subr.bf16.mxu0 %v1696_v26 }
 0x1df   :  { %1475 = vmatpush3.bf16.msra.mxu0 %v1697_v27 }
 0x1e0   :  { %1476 = vmatprep.subr.bf16.mxu0 %v1698_v28 }
 0x1e3   :  { %1477 = vmatpush3.bf16.msra.mxu0 %v1699_v29 }
 0x1e4   :  { %1478 = vmatprep.subr.bf16.mxu0 %v1700_v30 }
 0x1e7   :  { %1479 = vmatpush3.bf16.msra.mxu0 %v1701_v31 }
 0x1e8   :  { %1480 = vmatprep.subr.bf16.mxu0 %v1702_v32 }
 0x1eb   :  { %1481 = vmatpush3.bf16.msra.mxu0 %v1703_v33 }
 0x1ec   :  { %1482 = vmatprep.subr.bf16.mxu0 %v1704_v34 }
 0x1ef   :  { %1483 = vmatpush3.bf16.msra.mxu0 %v1705_v35 }
 0x1f0   :  { %1490 = vmatprep.subr.bf16.mxu0 %v1706_v36 }
 0x292   :  { %v894_v42 = vpop.f32.mrf.mxu0  ;;  %v935_v43 = vpop.f32.mrf.mxu1 }
 0x293   :  { %v895_v44 = vadd.f32 %v894_v42, %v523_v39  ;;  %v936_v7 = vadd.f32 %v935_v43, %v531_v5 }
 0x294   :  { %v896_v45 = vpop.f32.mrf.mxu0  ;;  %v937_v46 = vpop.f32.mrf.mxu1 }
 0x295   :  { %v897_v47 = vadd.f32 %v896_v45, %v527_v40  ;;  %v938_v48 = vadd.f32 %v937_v46, %v535_v41  ;;  %v942_v49 = vmax.f32 %v895_v44, 0.0  ;;  %v944_v10 = vmax.f32 %v936_v7, 0.0 }
 0x296   :  { %v898_v50 = vpop.f32.mrf.mxu0  ;;  %v939_v51 = vpop.f32.mrf.mxu1 }
 0x297   :  { %v943_v52 = vmax.f32 %v897_v47, 0.0  ;;  %v945_v53 = vmax.f32 %v938_v48, 0.0  ;;  %v946_v20 = vpack.c.bf16 %v942_v49, %v942_v49  ;;  %v948_v11 = vpack.c.bf16 %v944_v10, %v944_v10 }
 0x298   :  { %v899_v54 = vpop.f32.mrf.mxu0  ;;  %v940_v55 = vpop.f32.mrf.mxu1 }
 0x299   :  { %v947_v56 = vpack.c.bf16 %v943_v52, %v943_v52  ;;  %v949_v58 = vpack.c.bf16 %v945_v53, %v945_v53 }
 0x29b   :  { %1245 = vmatprep.mubr.bf16.mxu0 %v947_v56 }
 0x29c   :  { %1246 = vmatmul.mubr.bf16.vlgmr.msra.gmra.mxu0 %v946_v20 }
 0x29d   :  { %1491 = vmatpush3.bf16.msra.mxu0 %v1707_v18  ;;  %1285 = vmatprep.mubr.bf16.mxu0 %v949_v58 }
 0x29e   :  { %1492 = vmatprep.subr.bf16.mxu0 %v1708_v57 }
 0x2a1   :  { %1493 = vmatpush3.bf16.msra.mxu0 %v1709_v59 }
 0x2a2   :  { %1494 = vmatprep.subr.bf16.mxu0 %v1710_v60 }
 0x2a5   :  { %1495 = vmatpush3.bf16.msra.mxu0 %v1711_v61 }
 0x2a6   :  { %1496 = vmatprep.subr.bf16.mxu0 %v1712_v62 }
 0x2a9   :  { %1497 = vmatpush3.bf16.msra.mxu0 %v1713_v63 }
 0x2aa   :  { %1498 = vmatprep.subr.bf16.mxu0 %v1714_v0 }
 0x2ad   :  { %1499 = vmatpush3.bf16.msra.mxu0 %v1715_v1 }
 0x2ae   :  { %1500 = vmatprep.subr.bf16.mxu0 %v1716_v3 }
 0x2b1   :  { %1501 = vmatpush3.bf16.msra.mxu0 %v1717_v4 }
 0x2b2   :  { %1502 = vmatprep.subr.bf16.mxu0 %v1718_v6 }
 0x2b5   :  { %1503 = vmatpush3.bf16.msra.mxu0 %v1719_v17 }
 0x2b6   :  { %1504 = vmatprep.subr.bf16.mxu0 %v1720_v8 }
 0x2b9   :  { %1505 = vmatpush3.bf16.msra.mxu0 %v1721_v9 }
 0x2bc   :  { %1286 = vmatmul.mubr.bf16.vlgmr.msra.gmra.mxu0 %v948_v11 }
 0x35c   :  { %v1484_v13 = vpop.f32.mrf.mxu0 }
 0x35e   :  { %v1485_v14 = vpop.f32.mrf.mxu0 }
 0x35f   :  { %v1486_v19 = vadd.f32 %v1485_v14, %v1484_v13 }
 0x360   :  { %v1487_v15 = vpop.f32.mrf.mxu0 }
 0x361   :  { %v1248_v24 = vadd.f32 %v1486_v19, %v1435_v21 }
 0x362   :  { %v1488_v16 = vpop.f32.mrf.mxu0 }
 0x37c   :  { %v1506_v22 = vpop.f32.mrf.mxu0 }
 0x37e   :  { %v1507_v23 = vpop.f32.mrf.mxu0 }
 0x37f   :  { %v1508_v25 = vadd.f32 %v1507_v23, %v1506_v22 }
 0x380   :  { %v1509_v26 = vpop.f32.mrf.mxu0 }
 0x381   :  { %v1288_v27 = vadd.f32 %v1508_v25, %v1248_v24 }
 0x382   :  { %v1510_v28 = vpop.f32.mrf.mxu0 }
 0x383   :  { %v1300_v29 = vsel %vm1299_vm0, %v1288_v27, 0.0 }
 0x384   :  { %1301 = vadd.xlane.f32.xlu0 %v1300_v29 }
 0x39a   :  { %1295 = vperm.xlu0 %1521, %v1288_v27  }
 0x40d   :  { %v1302_v30 = vpop.xlane.xlu0 %1301 }
 0x40e   :  { %v1304_v32 = vmul.f32 0.125, %v1302_v30 }
 0x415   :  { %v1296_v31 = vpop.permute.xlu0 %1295 }
 0x416   :  { %v1298_v33 = vadd.f32 %v1296_v31, %v1288_v27 }
 0x418   :  { %v1305_v34 = vsub.f32 %v1298_v33, %v1304_v32 }
 0x41a   :  { %1306 = vst.msk [vmem:[#allocation7] sm:$0xff] %vm1299_vm0, %v1305_v34 }
 0x41b   :  { %1773 = shalt.err (!%p1770_p0)
}
 0x41c   :  { %1316 = dma.vmem_to_hbm [thread:$0]  %s1314_s22, 128, %s1968_s5, [#allocation4]  }
 0x41d   :  { %1786 = dma.done.wait [#allocation4], 128  }
 0x41e   :  { %1787 = vsyncadd [#allocation4], 4294967168 }
 0x41f   :  { %1320 = vsyncpa [#allocation3], 1 }
 0x420   :  { %1321 = vsyncpa [#allocation6], 1 }
 0x421   :  { %1322 = vsyncpa [#allocation4], 1 }

</bundles_post_ra>
